<compile_context>
chip_gen: v7x
topology: tpu7x:2x2x1
jax: 0.10.0
libtpu: 0.0.40
codegen_flags: <defaults>
</compile_context>

<pallas_src>
import functools
from typing import NamedTuple

import jax
import jax.numpy as jnp
from jax.experimental import pallas as pl
from jax.experimental.pallas import tpu as pltpu


# --------------------------------------------------------------------------- #
# Helpers
# --------------------------------------------------------------------------- #
def _round_up(x: int, m: int) -> int:
    return ((x + m - 1) // m) * m


def _tpu_generation() -> int:
    try:
        kind = jax.devices()[0].device_kind.lower()
    except Exception:
        return 0
    for g in (7, 6, 5, 4):
        if f"v{g}" in kind:
            return g
    return 0


def _tile_config():
    """Per-generation tile targets / VMEM budget (conservative fallback)."""
    g = _tpu_generation()
    if g >= 7:   # v7x: 64 MiB VMEM/TC, 2x256x256 MXU, 2 TCs/chip
        return dict(tb=256, tk=512, d_align=256, vmem=48 * 1024 * 1024)
    if g == 6:   # v6e: 128 MiB VMEM, 2x256x256 MXU
        return dict(tb=256, tk=1024, d_align=256, vmem=96 * 1024 * 1024)
    if g == 5:   # v5e: 128 MiB VMEM, 4x128x128 MXU, HBM-bound
        return dict(tb=128, tk=1024, d_align=128, vmem=64 * 1024 * 1024)
    # Unknown generation: sizes that fit everywhere.
    return dict(tb=128, tk=512, d_align=128, vmem=48 * 1024 * 1024)


def _vmem_bytes(tb, tk, dp, np_lanes):
    """Rough per-step VMEM estimate (double-buffered streams, single residents)."""
    x_b = 2 * tb * tk * 2            # [TB, TK] bf16, double-buffered
    w_b = 2 * tk * dp * 2            # [TK, DP] bf16, double-buffered
    res = dp * 4 + dp * np_lanes * 2 + np_lanes * 4   # bias / fused heads (x1)
    out_b = 2 * tb * np_lanes * 4    # [TB, NP] f32 output, double-buffered
    acc = tb * dp * 4                # f32 accumulator scratch
    return x_b + w_b + res + out_b + acc


class _Config(NamedTuple):
    K: int
    K_pad: int
    TK: int
    D: int
    DP: int
    NH: int
    NC: int
    NP: int
    tb_target: int
    vmem_limit: int
    compute_dtype: object


# --------------------------------------------------------------------------- #
# Kernel
# --------------------------------------------------------------------------- #
def _fused_classifier_kernel(x_ref, bbw_ref, bbb_ref, hw_ref, hb_ref, o_ref,
                             feat_acc):
    """Fused backbone projection + all classifier heads.

    Grid: (batch tiles [parallel], K tiles [arbitrary / reduction]).

    x_ref    : [TB, TK]   bf16  flattened-image tile
    bbw_ref  : [TK, DP]   bf16  backbone weight tile (contraction-first, D-padded)
    bbb_ref  : [1, DP]    f32   backbone bias (resident)
    hw_ref   : [DP, NP]   bf16  all heads fused, contraction-first, lane-padded
    hb_ref   : [1, NP]    f32   all head biases fused, lane-padded
    o_ref    : [TB, NP]   f32   fused logits (heads folded onto lanes)
    feat_acc : [TB, DP]   f32   VMEM accumulator for backbone features
    """
    k = pl.program_id(1)

    @pl.when(k == 0)
    def _():
        feat_acc[...] = jnp.zeros_like(feat_acc)

    # Backbone: accumulate x_tile @ w_tile into the f32 scratch.
    feat_acc[...] += jnp.dot(x_ref[...], bbw_ref[...],
                             preferred_element_type=jnp.float32)

    @pl.when(k == pl.num_programs(1) - 1)
    def _():
        feats = feat_acc[...] + bbb_ref[...]          # f32 bias add
        feats_lo = feats.astype(hw_ref.dtype)         # bf16 for the MXU
        logits = jnp.dot(feats_lo, hw_ref[...],
                         preferred_element_type=jnp.float32)
        o_ref[...] = (logits + hb_ref[...]).astype(o_ref.dtype)


# --------------------------------------------------------------------------- #
# Forward (per-call path; weights arrive pre-laid-out)
# --------------------------------------------------------------------------- #
def _forward_impl(x_nchw, bbw, bbb, hw, hb, *, cfg: _Config,
                  packed: bool, single_buffer_resident: bool):
    B = x_nchw.shape[0]
    x = x_nchw.reshape(B, -1)
    assert x.shape[1] == cfg.K, "flattened input dim mismatch"
    x = x.astype(cfg.compute_dtype)

    # Pad K (rarely needed; weights were already K-padded at init).
    if cfg.K_pad != cfg.K:
        x = jnp.pad(x, ((0, 0), (0, cfg.K_pad - cfg.K)))

    # Batch tiling: TB multiple of 16 (bf16 sublane packing), "parallel" axis.
    TB = min(cfg.tb_target, _round_up(B, 16))
    B_pad = _round_up(B, TB)
    if B_pad != B:
        x = jnp.pad(x, ((0, B_pad - B), (0, 0)))

    res_kw = {"pipeline_mode": pl.Buffered(1)} if single_buffer_resident else {}

    out = pl.pallas_call(
        _fused_classifier_kernel,
        out_shape=jax.ShapeDtypeStruct((B_pad, cfg.NP), jnp.float32),
        grid=(B_pad // TB, cfg.K_pad // cfg.TK),
        in_specs=[
            pl.BlockSpec((TB, cfg.TK), lambda b, k: (b, k)),        # image tile
            pl.BlockSpec((cfg.TK, cfg.DP), lambda b, k: (k, 0)),    # backbone W tile
            pl.BlockSpec((1, cfg.DP), lambda b, k: (0, 0), **res_kw),   # backbone bias
            pl.BlockSpec((cfg.DP, cfg.NP), lambda b, k: (0, 0), **res_kw),  # fused heads
            pl.BlockSpec((1, cfg.NP), lambda b, k: (0, 0), **res_kw),   # fused head bias
        ],
        out_specs=pl.BlockSpec((TB, cfg.NP), lambda b, k: (b, 0)),
        scratch_shapes=[pltpu.VMEM((TB, cfg.DP), jnp.float32)],
        compiler_params=pltpu.CompilerParams(
            dimension_semantics=("parallel", "arbitrary"),
            vmem_limit_bytes=cfg.vmem_limit,
        ),
    )(x, bbw, bbb, hw, hb)

    if packed:
        # Lane-dense packed logits [B, NP]; columns [h*NC + c] hold head h, class c.
        return out[:B]
    # Module semantics: per-head logits stacked as [NH, B, NC].
    return out[:B, : cfg.NH * cfg.NC].reshape(B, cfg.NH, cfg.NC).transpose(1, 0, 2)


# --------------------------------------------------------------------------- #
# One-time prep (hoisted out of the forward path)
# --------------------------------------------------------------------------- #
def prepare_linear_classifier(bb_w, bb_b, head_w, head_b,
                              *, compute_dtype=jnp.bfloat16):
    """Pre-lay-out frozen params: contraction-first, zero-padded, bf16."""
    D, K = bb_w.shape
    NH, NC, D2 = head_w.shape
    assert D == D2

    tiles = _tile_config()
    DP = _round_up(D, tiles["d_align"])
    NP = _round_up(max(NH * NC, 1), 128)

    TK = min(tiles["tk"], _round_up(K, 128))
    while TK > 128 and _vmem_bytes(tiles["tb"], TK, DP, NP) > int(tiles["vmem"] * 0.85):
        TK //= 2
    K_pad = _round_up(K, TK)

    # Backbone weights: [K_pad, DP] bf16, contraction-dim-first.
    bbw = jnp.zeros((K_pad, DP), compute_dtype)
    bbw = bbw.at[:K, :D].set(bb_w.T.astype(compute_dtype))
    bbb = jnp.zeros((1, DP), jnp.float32).at[0, :D].set(bb_b.astype(jnp.float32))

    # All heads fused: [DP, NP] bf16, contraction-dim-first, lane-padded.
    hw_fused = jnp.transpose(head_w, (2, 0, 1)).reshape(D, NH * NC)
    hw = jnp.zeros((DP, NP), compute_dtype).at[:D, :NH * NC].set(
        hw_fused.astype(compute_dtype))
    hb = jnp.zeros((1, NP), jnp.float32).at[0, :NH * NC].set(
        head_b.reshape(NH * NC).astype(jnp.float32))

    cfg = _Config(K=K, K_pad=K_pad, TK=TK, D=D, DP=DP, NH=NH, NC=NC, NP=NP,
                  tb_target=tiles["tb"], vmem_limit=tiles["vmem"],
                  compute_dtype=compute_dtype)
    return cfg, (bbw, bbb, hw, hb)


class PallasLinearClassifier:
    """forward(x) -> [NH, B, NC]  (== the module's list of per-head logits)."""

    def __init__(self, bb_w, bb_b, head_w, head_b, *, compute_dtype=jnp.bfloat16):
        self.cfg, self.params = prepare_linear_classifier(
            bb_w, bb_b, head_w, head_b, compute_dtype=compute_dtype)
        self._fwd_cache = {}
        self._single_buffer = None   # resolved on first call

    def _get_fwd(self, packed: bool, single: bool):
        key = (packed, single)
        if key not in self._fwd_cache:
            self._fwd_cache[key] = jax.jit(functools.partial(
                _forward_impl, cfg=self.cfg, packed=packed,
                single_buffer_resident=single))
        return self._fwd_cache[key]

    def _run(self, x, packed: bool):
        if self._single_buffer is None:
            try:
                out = self._get_fwd(packed, True)(x, *self.params)
                self._single_buffer = True
                return out
            except Exception:
                # Fallback if this JAX build rejects pipeline_mode=pl.Buffered(1).
                self._single_buffer = False
        return self._get_fwd(packed, self._single_buffer)(x, *self.params)

    def __call__(self, x):
        return self._run(x, packed=False)

    def packed_logits(self, x):
        """Lane-dense [B, NP] logits (heads folded onto lanes); avoids the
        lane-sparse unfold/transpose for downstream consumers that can index."""
        return self._run(x, packed=True)


# --------------------------------------------------------------------------- #
# Self-test
# --------------------------------------------------------------------------- #
if __name__ == "__main__":
    # Small deterministic configuration consistent with the module:
    #   batch=2, image 4x16x16, backbone.output_shape=32, num_classes=10,
    #   lr_exploration -> 3 classifier heads (head-0 params copied to all heads,
    #   exactly as __init__ does).
    B, C, H, W = 2, 4, 16, 16
    D_FEAT = 32
    NUM_CLASSES = 10
    NUM_HEADS = 3

    key = jax.random.PRNGKey(0)
    k_x, k_bb, k_head = jax.random.split(key, 3)

    x = jax.random.normal(k_x, (B, C, H, W), dtype=jnp.float32)

    # Frozen backbone params (deterministic stand-in for backbone(x)).
    bb_w = 0.02 * jax.random.normal(k_bb, (D_FEAT, C * H * W), dtype=jnp.float32)
    bb_b = jnp.zeros((D_FEAT,), dtype=jnp.float32)

    # Classifier heads: weight ~ N(0, 0.01), bias = 0, head 0 copied to all.
    w0 = 0.01 * jax.random.normal(k_head, (NUM_CLASSES, D_FEAT), dtype=jnp.float32)
    head_w = jnp.tile(w0[None], (NUM_HEADS, 1, 1))              # [NH, NC, D]
    head_b = jnp.zeros((NUM_HEADS, NUM_CLASSES), dtype=jnp.float32)

    model = PallasLinearClassifier(bb_w, bb_b, head_w, head_b)
    logits = jax.block_until_ready(model(x))
    assert logits.shape == (NUM_HEADS, B, NUM_CLASSES)

    # Pure-JAX reference with the same bf16 operand rounding / f32 accumulation.
    x_flat = x.reshape(B, -1)
    feats_ref = jnp.dot(x_flat.astype(jnp.bfloat16),
                        bb_w.T.astype(jnp.bfloat16),
                        preferred_element_type=jnp.float32) + bb_b
    for h in range(NUM_HEADS):
        ref = jnp.dot(feats_ref.astype(jnp.bfloat16),
                      head_w[h].T.astype(jnp.bfloat16),
                      preferred_element_type=jnp.float32) + head_b[h]
        assert jnp.allclose(logits[h], ref, atol=1e-2, rtol=1e-2), (
            f"head {h} mismatch: max abs err "
            f"{float(jnp.max(jnp.abs(logits[h] - ref)))}")

    # Packed (lane-dense) path exercises the same kernel; check consistency.
    packed = jax.block_until_ready(model.packed_logits(x))
    unfolded = packed[:, : NUM_HEADS * NUM_CLASSES].reshape(
        B, NUM_HEADS, NUM_CLASSES).transpose(1, 0, 2)
    assert jnp.allclose(unfolded, logits, atol=1e-6)

    print("KERNEL_OK")
</pallas_src>

<mosaic_0001>
module attributes {stable_mosaic.version = 11 : i64} {
  func.func @_fused_classifier_kernel(%arg0: i32, %arg1: i32, %arg2: memref<16x512xbf16, #tpu.memory_space<vmem>>, %arg3: memref<512x128xbf16, #tpu.memory_space<vmem>>, %arg4: memref<1x128xf32, #tpu.memory_space<vmem>>, %arg5: memref<128x128xbf16, #tpu.memory_space<vmem>>, %arg6: memref<1x128xf32, #tpu.memory_space<vmem>>, %arg7: memref<16x128xf32, #tpu.memory_space<vmem>>, %arg8: memref<16x128xf32, #tpu.memory_space<vmem>>) attributes {dimension_semantics = [#tpu.dimension_semantics<parallel>, #tpu.dimension_semantics<arbitrary>], iteration_bounds = array<i64: 1, 2>, scalar_prefetch = 0 : i64, scratch_operands = 1 : i64, tpu.core_type = #tpu.core_type<tc>, window_params = [{transform_indices = @transform_0, window_bounds = array<i64: 16, 512>}, {transform_indices = @transform_1, window_bounds = array<i64: 512, 128>}, {pipeline_mode = #tpu.pipeline_mode<synchronous>, transform_indices = @transform_2, window_bounds = array<i64: 1, 128>}, {pipeline_mode = #tpu.pipeline_mode<synchronous>, transform_indices = @transform_3, window_bounds = array<i64: 128, 128>}, {pipeline_mode = #tpu.pipeline_mode<synchronous>, transform_indices = @transform_4, window_bounds = array<i64: 1, 128>}, {transform_indices = @transform_5, window_bounds = array<i64: 16, 128>}]} {
    %c0_i32 = arith.constant 0 : i32
    %0 = arith.cmpi eq, %arg1, %c0_i32 : i32
    %1 = arith.extui %0 : i1 to i32
    %c0_i32_0 = arith.constant 0 : i32
    %2 = arith.cmpi ne, %1, %c0_i32_0 : i32
    scf.if %2 {
      %cst_9 = arith.constant 0.000000e+00 : f32
      %12 = vector.broadcast %cst_9 : f32 to vector<16x128xf32>
      %c0_10 = arith.constant 0 : index
      %c0_11 = arith.constant 0 : index
      %13 = vector.load %arg8[%c0_10, %c0_11] : memref<16x128xf32, #tpu.memory_space<vmem>>, vector<16x128xf32>
      tpu.vector_store %arg8[%c0_10, %c0_11], %12 {strides = array<i32>} : memref<16x128xf32, #tpu.memory_space<vmem>>, vector<16x128xf32>,
    } else {
    }
    %c0 = arith.constant 0 : index
    %c0_1 = arith.constant 0 : index
    %3 = vector.load %arg8[%c0, %c0_1] : memref<16x128xf32, #tpu.memory_space<vmem>>, vector<16x128xf32>
    %c0_2 = arith.constant 0 : index
    %c0_3 = arith.constant 0 : index
    %4 = vector.load %arg2[%c0_2, %c0_3] : memref<16x512xbf16, #tpu.memory_space<vmem>>, vector<16x512xbf16>
    %c0_4 = arith.constant 0 : index
    %c0_5 = arith.constant 0 : index
    %5 = vector.load %arg3[%c0_4, %c0_5] : memref<512x128xbf16, #tpu.memory_space<vmem>>, vector<512x128xbf16>
    %cst = arith.constant dense<0.000000e+00> : vector<16x128xf32>
    %6 = tpu.matmul %4, %5, %cst {dimension_numbers = #tpu.dot_dimension_numbers<[1], [0], [0], [1], [0, 0, 1, 1], [], []>} : vector<16x512xbf16>, vector<512x128xbf16>, vector<16x128xf32> -> vector<16x128xf32>
    %7 = arith.addf %3, %6 : vector<16x128xf32>
    %c0_6 = arith.constant 0 : index
    %c0_7 = arith.constant 0 : index
    %8 = vector.load %arg8[%c0_6, %c0_7] : memref<16x128xf32, #tpu.memory_space<vmem>>, vector<16x128xf32>
    tpu.vector_store %arg8[%c0_6, %c0_7], %7 {strides = array<i32>} : memref<16x128xf32, #tpu.memory_space<vmem>>, vector<16x128xf32>,
    %c1_i32 = arith.constant 1 : i32
    %9 = arith.cmpi eq, %arg1, %c1_i32 : i32
    %10 = arith.extui %9 : i1 to i32
    %c0_i32_8 = arith.constant 0 : i32
    %11 = arith.cmpi ne, %10, %c0_i32_8 : i32
    scf.if %11 {
      %c0_9 = arith.constant 0 : index
      %c0_10 = arith.constant 0 : index
      %12 = vector.load %arg8[%c0_9, %c0_10] : memref<16x128xf32, #tpu.memory_space<vmem>>, vector<16x128xf32>
      %c0_11 = arith.constant 0 : index
      %c0_12 = arith.constant 0 : index
      %13 = vector.load %arg4[%c0_11, %c0_12] : memref<1x128xf32, #tpu.memory_space<vmem>>, vector<1x128xf32>
      %14 = vector.broadcast %13 : vector<1x128xf32> to vector<16x128xf32>
      %15 = arith.addf %12, %14 : vector<16x128xf32>
      %16 = arith.truncf %15 : vector<16x128xf32> to vector<16x128xbf16>
      %c0_13 = arith.constant 0 : index
      %c0_14 = arith.constant 0 : index
      %17 = vector.load %arg5[%c0_13, %c0_14] : memref<128x128xbf16, #tpu.memory_space<vmem>>, vector<128x128xbf16>
      %cst_15 = arith.constant dense<0.000000e+00> : vector<16x128xf32>
      %18 = tpu.matmul %16, %17, %cst_15 {dimension_numbers = #tpu.dot_dimension_numbers<[1], [0], [0], [1], [0, 0, 1, 1], [], []>} : vector<16x128xbf16>, vector<128x128xbf16>, vector<16x128xf32> -> vector<16x128xf32>
      %c0_16 = arith.constant 0 : index
      %c0_17 = arith.constant 0 : index
      %19 = vector.load %arg6[%c0_16, %c0_17] : memref<1x128xf32, #tpu.memory_space<vmem>>, vector<1x128xf32>
      %20 = vector.broadcast %19 : vector<1x128xf32> to vector<16x128xf32>
      %21 = arith.addf %18, %20 : vector<16x128xf32>
      %c0_18 = arith.constant 0 : index
      %c0_19 = arith.constant 0 : index
      %22 = vector.load %arg7[%c0_18, %c0_19] : memref<16x128xf32, #tpu.memory_space<vmem>>, vector<16x128xf32>
      tpu.vector_store %arg7[%c0_18, %c0_19], %21 {strides = array<i32>} : memref<16x128xf32, #tpu.memory_space<vmem>>, vector<16x128xf32>,
    } else {
    }
    return
  }
  func.func @transform_0(%arg0: i32, %arg1: i32) -> (i32, i32) {
    %c0_i32 = arith.constant 0 : i32
    return %arg0, %arg1 : i32, i32
  }
  func.func @transform_1(%arg0: i32, %arg1: i32) -> (i32, i32) {
    %c0_i32 = arith.constant 0 : i32
    %c0_i32_0 = arith.constant 0 : i32
    return %arg1, %c0_i32 : i32, i32
  }
  func.func @transform_2(%arg0: i32, %arg1: i32) -> (i32, i32) {
    %c0_i32 = arith.constant 0 : i32
    %c0_i32_0 = arith.constant 0 : i32
    %c0_i32_1 = arith.constant 0 : i32
    return %c0_i32, %c0_i32_0 : i32, i32
  }
  func.func @transform_3(%arg0: i32, %arg1: i32) -> (i32, i32) {
    %c0_i32 = arith.constant 0 : i32
    %c0_i32_0 = arith.constant 0 : i32
    %c0_i32_1 = arith.constant 0 : i32
    return %c0_i32, %c0_i32_0 : i32, i32
  }
  func.func @transform_4(%arg0: i32, %arg1: i32) -> (i32, i32) {
    %c0_i32 = arith.constant 0 : i32
    %c0_i32_0 = arith.constant 0 : i32
    %c0_i32_1 = arith.constant 0 : i32
    return %c0_i32, %c0_i32_0 : i32, i32
  }
  func.func @transform_5(%arg0: i32, %arg1: i32) -> (i32, i32) {
    %c0_i32 = arith.constant 0 : i32
    %c0_i32_0 = arith.constant 0 : i32
    return %arg0, %c0_i32 : i32, i32
  }
}

module attributes {stable_mosaic.version = 11 : i64} {
  func.func @_fused_classifier_kernel(%arg0: i32, %arg1: i32, %arg2: memref<16x512xbf16, #tpu.memory_space<vmem>>, %arg3: memref<512x128xbf16, #tpu.memory_space<vmem>>, %arg4: memref<1x128xf32, #tpu.memory_space<vmem>>, %arg5: memref<128x128xbf16, #tpu.memory_space<vmem>>, %arg6: memref<1x128xf32, #tpu.memory_space<vmem>>, %arg7: memref<16x128xf32, #tpu.memory_space<vmem>>, %arg8: memref<16x128xf32, #tpu.memory_space<vmem>>) attributes {dimension_semantics = [#tpu.dimension_semantics<parallel>, #tpu.dimension_semantics<arbitrary>], iteration_bounds = array<i64: 1, 2>, scalar_prefetch = 0 : i64, scratch_operands = 1 : i64, tpu.core_type = #tpu.core_type<tc>, window_params = [{transform_indices = @transform_0, window_bounds = array<i64: 16, 512>}, {transform_indices = @transform_1, window_bounds = array<i64: 512, 128>}, {pipeline_mode = #tpu.pipeline_mode<synchronous>, transform_indices = @transform_2, window_bounds = array<i64: 1, 128>}, {pipeline_mode = #tpu.pipeline_mode<synchronous>, transform_indices = @transform_3, window_bounds = array<i64: 128, 128>}, {pipeline_mode = #tpu.pipeline_mode<synchronous>, transform_indices = @transform_4, window_bounds = array<i64: 1, 128>}, {transform_indices = @transform_5, window_bounds = array<i64: 16, 128>}]} {
    %c0_i32 = arith.constant 0 : i32
    %0 = arith.cmpi eq, %arg1, %c0_i32 : i32
    %1 = arith.extui %0 : i1 to i32
    %c0_i32_0 = arith.constant 0 : i32
    %2 = arith.cmpi ne, %1, %c0_i32_0 : i32
    scf.if %2 {
      %cst_9 = arith.constant 0.000000e+00 : f32
      %12 = vector.broadcast %cst_9 : f32 to vector<16x128xf32>
      %c0_10 = arith.constant 0 : index
      %c0_11 = arith.constant 0 : index
      %13 = vector.load %arg8[%c0_10, %c0_11] : memref<16x128xf32, #tpu.memory_space<vmem>>, vector<16x128xf32>
      tpu.vector_store %arg8[%c0_10, %c0_11], %12 {strides = array<i32>} : memref<16x128xf32, #tpu.memory_space<vmem>>, vector<16x128xf32>,
    } else {
    }
    %c0 = arith.constant 0 : index
    %c0_1 = arith.constant 0 : index
    %3 = vector.load %arg8[%c0, %c0_1] : memref<16x128xf32, #tpu.memory_space<vmem>>, vector<16x128xf32>
    %c0_2 = arith.constant 0 : index
    %c0_3 = arith.constant 0 : index
    %4 = vector.load %arg2[%c0_2, %c0_3] : memref<16x512xbf16, #tpu.memory_space<vmem>>, vector<16x512xbf16>
    %c0_4 = arith.constant 0 : index
    %c0_5 = arith.constant 0 : index
    %5 = vector.load %arg3[%c0_4, %c0_5] : memref<512x128xbf16, #tpu.memory_space<vmem>>, vector<512x128xbf16>
    %cst = arith.constant dense<0.000000e+00> : vector<16x128xf32>
    %6 = tpu.matmul %4, %5, %cst {dimension_numbers = #tpu.dot_dimension_numbers<[1], [0], [0], [1], [0, 0, 1, 1], [], []>} : vector<16x512xbf16>, vector<512x128xbf16>, vector<16x128xf32> -> vector<16x128xf32>
    %7 = arith.addf %3, %6 : vector<16x128xf32>
    %c0_6 = arith.constant 0 : index
    %c0_7 = arith.constant 0 : index
    %8 = vector.load %arg8[%c0_6, %c0_7] : memref<16x128xf32, #tpu.memory_space<vmem>>, vector<16x128xf32>
    tpu.vector_store %arg8[%c0_6, %c0_7], %7 {strides = array<i32>} : memref<16x128xf32, #tpu.memory_space<vmem>>, vector<16x128xf32>,
    %c1_i32 = arith.constant 1 : i32
    %9 = arith.cmpi eq, %arg1, %c1_i32 : i32
    %10 = arith.extui %9 : i1 to i32
    %c0_i32_8 = arith.constant 0 : i32
    %11 = arith.cmpi ne, %10, %c0_i32_8 : i32
    scf.if %11 {
      %c0_9 = arith.constant 0 : index
      %c0_10 = arith.constant 0 : index
      %12 = vector.load %arg8[%c0_9, %c0_10] : memref<16x128xf32, #tpu.memory_space<vmem>>, vector<16x128xf32>
      %c0_11 = arith.constant 0 : index
      %c0_12 = arith.constant 0 : index
      %13 = vector.load %arg4[%c0_11, %c0_12] : memref<1x128xf32, #tpu.memory_space<vmem>>, vector<1x128xf32>
      %14 = vector.broadcast %13 : vector<1x128xf32> to vector<16x128xf32>
      %15 = arith.addf %12, %14 : vector<16x128xf32>
      %16 = arith.truncf %15 : vector<16x128xf32> to vector<16x128xbf16>
      %c0_13 = arith.constant 0 : index
      %c0_14 = arith.constant 0 : index
      %17 = vector.load %arg5[%c0_13, %c0_14] : memref<128x128xbf16, #tpu.memory_space<vmem>>, vector<128x128xbf16>
      %cst_15 = arith.constant dense<0.000000e+00> : vector<16x128xf32>
      %18 = tpu.matmul %16, %17, %cst_15 {dimension_numbers = #tpu.dot_dimension_numbers<[1], [0], [0], [1], [0, 0, 1, 1], [], []>} : vector<16x128xbf16>, vector<128x128xbf16>, vector<16x128xf32> -> vector<16x128xf32>
      %c0_16 = arith.constant 0 : index
      %c0_17 = arith.constant 0 : index
      %19 = vector.load %arg6[%c0_16, %c0_17] : memref<1x128xf32, #tpu.memory_space<vmem>>, vector<1x128xf32>
      %20 = vector.broadcast %19 : vector<1x128xf32> to vector<16x128xf32>
      %21 = arith.addf %18, %20 : vector<16x128xf32>
      %c0_18 = arith.constant 0 : index
      %c0_19 = arith.constant 0 : index
      %22 = vector.load %arg7[%c0_18, %c0_19] : memref<16x128xf32, #tpu.memory_space<vmem>>, vector<16x128xf32>
      tpu.vector_store %arg7[%c0_18, %c0_19], %21 {strides = array<i32>} : memref<16x128xf32, #tpu.memory_space<vmem>>, vector<16x128xf32>,
    } else {
    }
    return
  }
  func.func @transform_0(%arg0: i32, %arg1: i32) -> (i32, i32) {
    %c0_i32 = arith.constant 0 : i32
    return %arg0, %arg1 : i32, i32
  }
  func.func @transform_1(%arg0: i32, %arg1: i32) -> (i32, i32) {
    %c0_i32 = arith.constant 0 : i32
    %c0_i32_0 = arith.constant 0 : i32
    return %arg1, %c0_i32 : i32, i32
  }
  func.func @transform_2(%arg0: i32, %arg1: i32) -> (i32, i32) {
    %c0_i32 = arith.constant 0 : i32
    %c0_i32_0 = arith.constant 0 : i32
    %c0_i32_1 = arith.constant 0 : i32
    return %c0_i32, %c0_i32_0 : i32, i32
  }
  func.func @transform_3(%arg0: i32, %arg1: i32) -> (i32, i32) {
    %c0_i32 = arith.constant 0 : i32
    %c0_i32_0 = arith.constant 0 : i32
    %c0_i32_1 = arith.constant 0 : i32
    return %c0_i32, %c0_i32_0 : i32, i32
  }
  func.func @transform_4(%arg0: i32, %arg1: i32) -> (i32, i32) {
    %c0_i32 = arith.constant 0 : i32
    %c0_i32_0 = arith.constant 0 : i32
    %c0_i32_1 = arith.constant 0 : i32
    return %c0_i32, %c0_i32_0 : i32, i32
  }
  func.func @transform_5(%arg0: i32, %arg1: i32) -> (i32, i32) {
    %c0_i32 = arith.constant 0 : i32
    %c0_i32_0 = arith.constant 0 : i32
    return %arg0, %c0_i32 : i32, i32
  }
}

</mosaic_0001>

<bundles_post_ra>
// kernel: _forward_impl.1
= control target key start
LH: loop header
LB: loop body
LE: loop exit
PB: predicated region body
PF: predicated region fallthrough
CT: control target
= control target key end

     0   :  { %10 = vsyncpa [#allocation5], 0  ;;  %s1461_s0 = inlined_call_operand.vmem [shape: bf16[16,1024], index: 0, kind: input, shape index: {}]   ;;  %s1462_s1 = inlined_call_operand.hbm [shape: bf16[1024,128], index: 1, kind: input, shape index: {}]   ;;  %s1463_s2 = inlined_call_operand.vmem [shape: f32[1,128], index: 2, kind: input, shape index: {}]   ;;  %s1464_s3 = inlined_call_operand.vmem [shape: bf16[128,128], index: 3, kind: input, shape index: {}]   ;;  %s1465_s4 = inlined_call_operand.vmem [shape: f32[1,128], index: 4, kind: input, shape index: {}]   ;;  %s1466_s5 = inlined_call_operand.vmem [shape: f32[16,128], index: 5, kind: output, shape index: {}]  }
   0x1   :  { %12 = vsyncpa [#allocation5 + $0x1], 0  ;;  %s1267_s18 = smov 0   ;;  %s1269_s19 = smov 0  }
   0x2   :  { %s1271_s20 = smov 0   ;;  %s1273_s21 = smov 0  }
   0x3   :  { %s1275_s22 = smov 0   ;;  %s1277_s23 = smov 0  }
   0x4 LB: > { %s911_s24 = sadd.s32 4294967295, %s1229_s23   ;;  %s27_s25 = sadd.s32 1, %s1225_s22  ;;  %s1229_s23 = sphi %s1277_s23, %s18_s23   ;;  %s1225_s22 = sphi %s1275_s22, %s1473_s22   ;;  %s1221_s21 = sphi %s1273_s21, %s1472_s21   ;;  %s1217_s20 = sphi %s1271_s20, %s1471_s20   ;;  %s1213_s19 = sphi %s1269_s19, %s1470_s19   ;;  %s1209_s18 = sphi %s1267_s18, %s1469_s18  }
   0x5   : > { %p28_p0 = scmp.ge.s32.totalorder %s27_s25, 2  ;;  %s39_s26 = sadd.s32 1, %s1217_s20 }
   0x6   : > { %p46_p1 = scmp.ne.s32.totalorder %s1217_s20, %s1213_s19  ;;  %p47_p2 = scmp.eq.s32.totalorder %s1229_s23, 0 }
   0x7   : > { %s1475_s25 = smov (%p28_p0, %s27_s25), 0  ;;  %p78_p4 = scmp.ne.s32.totalorder %s1213_s19, %s1209_s18 }
   0x8   : > { %p1303_p3 = por %p47_p2, %p46_p1  ;;  %s35_s28 = ssub.s32 %s1225_s22, %s1475_s25 }
   0x9   : > { %p79_p5 = scmp.eq.s32.totalorder %s911_s24, 0  ;;  %p37_p6 = scmp.eq.s32.totalorder %s35_s28, 0 }
   0xa   : > { %p913_p8 = scmp.ge.s32.totalorder %s1229_s23, 2 }
   0xb   : > { %p1310_p7 = por %p79_p5, %p78_p4 }
   0xc   : > { %s1315_s30 = scalar_select %p37_p6, %s1217_s20, %s39_s26  }
   0xd   : > { %196 = sbr.rel (%p913_p8) target bundleno = 53 (0x35), region = 28 }
  0x14   : > { %199 = sbr.rel (!%p1303_p3) target bundleno = 27 (0x1b), region = 32  ;;  %s201_s6 = sand.u32 (%p1303_p3), 1, %s1217_s20  }
  0x15   : > { %s975_s7 = sshll.u32 (%p1303_p3), %s1225_s22, 4  ;;  %s914_s8 = sshll.u32 (%p1303_p3), %s201_s6, 5 }
  0x16   : > { %s209_s11 = scalar_lea.vmem (%p1303_p3), %s1461_s0, %s975_s7  ;;  %s203_s12 = scalar_lea.vmem (%p1303_p3), [#allocation3], %s914_s8 }
  0x17   : > { %v222_v0 = vld [vmem:[%s209_s11] sm:$0xff] (%p1303_p3)  ;;  %v224_v1 = vld [vmem:[%s209_s11 + $0x8] sm:$0xff] (%p1303_p3) }
  0x18   : > { %v226_v2 = vld [vmem:[%s209_s11 + $0x20] sm:$0xff] (%p1303_p3)  ;;  %223 = vst [vmem:[%s203_s12] sm:$0xff] (%p1303_p3), %v222_v0  ;;  %225 = vst [vmem:[%s203_s12 + $0x8] sm:$0xff] (%p1303_p3), %v224_v1  ;;  %v228_v3 = vld [vmem:[%s209_s11 + $0x28] sm:$0xff] (%p1303_p3) }
  0x19   : > { %227 = vst [vmem:[%s203_s12 + $0x10] sm:$0xff] (%p1303_p3), %v226_v2  ;;  %229 = vst [vmem:[%s203_s12 + $0x18] sm:$0xff] (%p1303_p3), %v228_v3 }
  0x1b PF: > { %s236_s13 = sand.u32 1, %s1217_s20   ;;  %s976_s14 = sshll.u32 %s1225_s22, 12 }
  0x1c   : > { %s917_s15 = sshll.u32 %s236_s13, 8  ;;  %s1330_s18 = scalar_lea.hbm %s1462_s1, %s976_s14 }
  0x1d   : > { %s240_s24 = scalar_lea.vmem [#allocation4], %s917_s15  ;;  %s1334_s28 = scalar_lea.sflag [#allocation5], %s236_s13 }
  0x1e   : > { %s247_s26 = sshll.u32 %s240_s24, 4  ;;  %s1151_s6 = scalar_lea.hbm %s1330_s18, 4096  ;;  %s1332_s26 = int_to_ptr.vmem [resolvable:$true] %s247_s26 }
  0x1f   : > { %p1152_p9 = scmp.ne.s32.totalorder %s1330_s18, %s1151_s6  ;;  %s1155_s9 = scalar_lea.hbm %s1462_s1, 8192 }
  0x20   : > { %p1156_p12 = scmp.lt.u32.totalorder %s1330_s18, %s1462_s1  ;;  %p1157_p13 = scmp.lt.u32.totalorder %s1155_s9, %s1151_s6 }
  0x21   : > { %p1153_p10 = pnand %p1152_p9, %p1303_p3  ;;  %p1159_p1 = scmp.lt.u32.totalorder %s1151_s6, %s1330_s18 }
  0x22   : > { %p1158_p0 = por %p1157_p13, %p1156_p12 }
  0x23   : > { %p1154_p11 = pneg %p1153_p10 }
  0x24   : > { %p1160_p2 = por %p1159_p1, %p1158_p0 }
  0x26   : > { %p1161_p4 = pnand %p1160_p2, %p1154_p11 }
  0x28   : > { %1164 = shalt.err (!%p1161_p4)
}
  0x29   : > { %s1165_s12 = scalar_lea.vmem %s1332_s26, 4096  ;;  %s1231_s13 = smov [#allocation4]  }
  0x2a   : > { %p1166_p5 = scmp.ne.s32.totalorder %s1332_s26, %s1165_s12  ;;  %s1169_s14 = sshll.u32 %s1231_s13, 4  ;;  %s1170_s14 = int_to_ptr.vmem [resolvable:$false] %s1169_s14 }
  0x2b   : > { %s1171_s15 = scalar_lea.vmem %s1170_s14, 8192  ;;  %p1172_p9 = scmp.lt.s32.totalorder %s1332_s26, %s1170_s14 }
  0x2c   : > { %p1167_p6 = pnand %p1166_p5, %p1303_p3  ;;  %p1173_p10 = scmp.lt.s32.totalorder %s1171_s15, %s1165_s12 }
  0x2e   : > { %p1168_p8 = pneg %p1167_p6  ;;  %p1174_p12 = por %p1173_p10, %p1172_p9 }
  0x30   : > { %p1175_p13 = pnand %p1174_p12, %p1168_p8 }
  0x32   : > { %1178 = shalt.err (!%p1175_p13)
}
  0x33   : > { %s1232_s16 = smov 64   ;;  %s1233_s17 = smov 4  }
  0x34   : > { %1050 = dma.hbm_to_vmem [thread:$0]  (%p1303_p3), %s1330_s18, 4096, %s1332_s26, %s1334_s28, %s1232_s16, %s1232_s16, %s1233_s17  }
  0x35 PF: > { %p920_p11 = scmp.ge.s32.totalorder %s1229_s23, 1  ;;  %p255_p0 = scmp.lt.s32.totalorder %s1229_s23, 3 }
  0x37   : > { %p256_p1 = pnand %p920_p11, %p255_p0 }
  0x38   : > { %s262_s24 = sand.u32 (!%p256_p1), 1, %s1213_s19  }
  0x39   : > { %259 = sbr.rel (%p256_p1) target bundleno = 559 (0x22f), region = 59  ;;  %s921_s6 = sshll.u32 (!%p256_p1), %s262_s24, 5 }
  0x3a   : > { %s922_s7 = sshll.u32 (!%p256_p1), %s262_s24, 8  ;;  %s1361_s8 = scalar_lea.vmem (!%p256_p1), [#allocation3], %s921_s6 }
  0x3b   : > { %s269_s9 = scalar_lea.sflag (!%p256_p1), [#allocation5], %s262_s24  ;;  %s1363_s10 = scalar_lea.vmem (!%p256_p1), [#allocation4], %s922_s7 }
  0x40   : > { %1204 = dma.done.wait (%p1310_p7), %s269_s9, 4096  }
  0x41   : > { %1206 = vsyncadd (%p1310_p7), %s269_s9, 4294963200  ;;  %p923_p3 = scmp.ne.s32.totalorder %s1221_s21, 0 }
  0x42   : > { %v1234_v4 = vmov (!%p923_p3), 0.0  }
  0x43   : > { %316 = sbr.rel (%p923_p3) target bundleno = 74 (0x4a), region = 71  ;;  %317 = vst [vmem:[#allocation2] sm:$0xff] (!%p923_p3), %v1234_v4  ;;  %318 = vst [vmem:[#allocation2 + $0x8] sm:$0xff] (!%p923_p3), %v1234_v4 }
  0x4a PF: > { %v1105_v5 = vld [vmem:[%s1363_s10 + $0x40] sm:$0xff]   ;;  %v1109_v9 = vld [vmem:[%s1363_s10 + $0x48] sm:$0xff]   ;;  %v1113_v13 = vld [vmem:[%s1363_s10 + $0x50] sm:$0xff]   ;;  %p960_p7 = scmp.ne.s32.totalorder %s1221_s21, 1 }
  0x4b   : > { %v1106_v6 = vld [vmem:[%s1363_s10 + $0xc0] sm:$0xff]   ;;  %977 = vmatprep.subr.bf16.mxu0 %v1105_v5  ;;  %v1110_v10 = vld [vmem:[%s1363_s10 + $0xc8] sm:$0xff]   ;;  %v1114_v14 = vld [vmem:[%s1363_s10 + $0xd0] sm:$0xff]   ;;  %v1235_v60 = vmov (!%p960_p7), 0.0   ;;  %vm1236_vm0 = vmmov (!%p960_p7), 0  }
  0x4c   : > { %v1107_v7 = vld [vmem:[%s1363_s10] sm:$0xff]   ;;  %999 = vmatprep.subr.bf16.mxu1 %v1106_v6  ;;  %v1111_v11 = vld [vmem:[%s1363_s10 + $0x8] sm:$0xff]   ;;  %v1115_v15 = vld [vmem:[%s1363_s10 + $0x10] sm:$0xff]  }
  0x4d   : > { %v1108_v8 = vld [vmem:[%s1363_s10 + $0x80] sm:$0xff]   ;;  %978 = vmatpush3.bf16.msra.mxu0 %v1107_v7  ;;  %v1112_v12 = vld [vmem:[%s1363_s10 + $0x88] sm:$0xff]   ;;  %v1116_v16 = vld [vmem:[%s1363_s10 + $0x90] sm:$0xff]  }
  0x4e   : > { %1000 = vmatpush3.bf16.msra.mxu1 %v1108_v8  ;;  %979 = vmatprep.subr.bf16.mxu0 %v1109_v9  ;;  %v1117_v17 = vld [vmem:[%s1363_s10 + $0x58] sm:$0xff]   ;;  %v1121_v21 = vld [vmem:[%s1363_s10 + $0x60] sm:$0xff]   ;;  %v1125_v25 = vld [vmem:[%s1363_s10 + $0x68] sm:$0xff]  }
  0x4f   : > { %1001 = vmatprep.subr.bf16.mxu1 %v1110_v10  ;;  %v1118_v18 = vld [vmem:[%s1363_s10 + $0xd8] sm:$0xff]   ;;  %v1122_v22 = vld [vmem:[%s1363_s10 + $0xe0] sm:$0xff]   ;;  %v1126_v26 = vld [vmem:[%s1363_s10 + $0xe8] sm:$0xff]  }
  0x50   : > { %v1119_v19 = vld [vmem:[%s1363_s10 + $0x18] sm:$0xff]   ;;  %v1123_v23 = vld [vmem:[%s1363_s10 + $0x20] sm:$0xff]   ;;  %v1127_v27 = vld [vmem:[%s1363_s10 + $0x28] sm:$0xff]  }
  0x51   : > { %980 = vmatpush3.bf16.msra.mxu0 %v1111_v11  ;;  %v1120_v20 = vld [vmem:[%s1363_s10 + $0x98] sm:$0xff]   ;;  %v1124_v24 = vld [vmem:[%s1363_s10 + $0xa0] sm:$0xff]   ;;  %v1128_v28 = vld [vmem:[%s1363_s10 + $0xa8] sm:$0xff]  }
  0x52   : > { %1002 = vmatpush3.bf16.msra.mxu1 %v1112_v12  ;;  %981 = vmatprep.subr.bf16.mxu0 %v1113_v13  ;;  %v1129_v29 = vld [vmem:[%s1363_s10 + $0x70] sm:$0xff]   ;;  %v1133_v33 = vld [vmem:[%s1363_s10 + $0x78] sm:$0xff]   ;;  %v1145_v62 = vld [vmem:[%s1464_s3 + $0x10] sm:$0xff] (!%p960_p7)  }
  0x53   : > { %1003 = vmatprep.subr.bf16.mxu1 %v1114_v14  ;;  %v1130_v30 = vld [vmem:[%s1363_s10 + $0xf0] sm:$0xff]   ;;  %v1134_v34 = vld [vmem:[%s1363_s10 + $0xf8] sm:$0xff]   ;;  %v1146_v63 = vld [vmem:[%s1464_s3 + $0x18] sm:$0xff] (!%p960_p7)  }
  0x54   : > { %v1131_v31 = vld [vmem:[%s1363_s10 + $0x30] sm:$0xff]   ;;  %v1135_v35 = vld [vmem:[%s1363_s10 + $0x38] sm:$0xff]   ;;  %v1149_v2 = vld [vmem:[%s1464_s3 + $0x30] sm:$0xff] (!%p960_p7)  }
  0x55   : > { %982 = vmatpush3.bf16.msra.mxu0 %v1115_v15  ;;  %v1132_v32 = vld [vmem:[%s1363_s10 + $0xb0] sm:$0xff]   ;;  %v1136_v36 = vld [vmem:[%s1363_s10 + $0xb8] sm:$0xff]   ;;  %v1150_v8 = vld [vmem:[%s1464_s3 + $0x38] sm:$0xff] (!%p960_p7)  }
  0x56   : > { %1004 = vmatpush3.bf16.msra.mxu1 %v1116_v16  ;;  %983 = vmatprep.subr.bf16.mxu0 %v1117_v17  ;;  %v1137_v37 = vld [vmem:[%s1361_s8] ss:$16 sps:$4 sm:$0xff]   ;;  %v1139_v38 = vld [vmem:[%s1361_s8 + $0x4] ss:$16 sps:$4 sm:$0xff]   ;;  %v1140_v39 = vld [vmem:[%s1361_s8 + $0x8] ss:$16 sps:$4 sm:$0xff]  }
  0x57   : > { %1005 = vmatprep.subr.bf16.mxu1 %v1118_v18  ;;  %v1142_v40 = vld [vmem:[%s1361_s8 + $0xc] ss:$16 sps:$4 sm:$0xff]   ;;  %633 = vmatprep.mubr.bf16.mxu0 %v1139_v38  ;;  %v319_v50 = vld [vmem:[#allocation2] sm:$0xff] }
  0x58   : > { %674 = vmatprep.mubr.bf16.mxu1 %v1142_v40  ;;  %v320_v55 = vld [vmem:[#allocation2 + $0x8] sm:$0xff]  ;;  %v1143_v59 = vld [vmem:[%s1464_s3] sm:$0xff] (!%p960_p7)  }
  0x59   : > { %984 = vmatpush3.bf16.msra.mxu0 %v1119_v19  ;;  %v1144_v61 = vld [vmem:[%s1464_s3 + $0x8] sm:$0xff] (!%p960_p7)   ;;  %v1147_v0 = vld [vmem:[%s1464_s3 + $0x20] sm:$0xff] (!%p960_p7)  }
  0x5a   : > { %1006 = vmatpush3.bf16.msra.mxu1 %v1120_v20  ;;  %985 = vmatprep.subr.bf16.mxu0 %v1121_v21  ;;  %v1148_v1 = vld [vmem:[%s1464_s3 + $0x28] sm:$0xff] (!%p960_p7)   ;;  %v961_v5 = vld [vmem:[%s1463_s2] ss:$0 sm:$0xff] (!%p960_p7) }
  0x5b   : > { %1007 = vmatprep.subr.bf16.mxu1 %v1122_v22  ;;  %v962_v10 = vld [vmem:[%s1465_s4] ss:$0 sm:$0xff] (!%p960_p7) }
  0x5d   : > { %986 = vmatpush3.bf16.msra.mxu0 %v1123_v23 }
  0x5e   : > { %1008 = vmatpush3.bf16.msra.mxu1 %v1124_v24  ;;  %987 = vmatprep.subr.bf16.mxu0 %v1125_v25 }
  0x5f   : > { %1009 = vmatprep.subr.bf16.mxu1 %v1126_v26 }
  0x61   : > { %988 = vmatpush3.bf16.msra.mxu0 %v1127_v27 }
  0x62   : > { %1010 = vmatpush3.bf16.msra.mxu1 %v1128_v28  ;;  %989 = vmatprep.subr.bf16.mxu0 %v1129_v29 }
  0x63   : > { %1011 = vmatprep.subr.bf16.mxu1 %v1130_v30 }
  0x65   : > { %990 = vmatpush3.bf16.msra.mxu0 %v1131_v31 }
  0x66   : > { %1012 = vmatpush3.bf16.msra.mxu1 %v1132_v32  ;;  %991 = vmatprep.subr.bf16.mxu0 %v1133_v33 }
  0x67   : > { %1013 = vmatprep.subr.bf16.mxu1 %v1134_v34 }
  0x69   : > { %992 = vmatpush3.bf16.msra.mxu0 %v1135_v35 }
  0x6a   : > { %1014 = vmatpush3.bf16.msra.mxu1 %v1136_v36  ;;  %1030 = vmatprep.subr.bf16.mxu0 (!%p960_p7), %v1235_v60 }
  0x6c   : > { %634 = vmatmul.mubr.bf16.vlgmr.msra.gmra.mrb[0].mxu0 %v1137_v37 }
  0x6d   : > { %675 = vmatmul.mubr.bf16.vlgmr.msra.gmra.mrb[0].mxu1 %v1140_v39  ;;  %1031 = vmatpush3.bf16.msra.mxu0 (!%p960_p7), %v1143_v59 }
  0x6e   : > { %1046 = vmatprep.mubr.msk.bf16.mxu0 (!%p960_p7), %vm1236_vm0, %v1235_v60  ;;  %1032 = vmatprep.subr.bf16.mxu0 (!%p960_p7), %v1235_v60 }
  0x71   : > { %1033 = vmatpush3.bf16.msra.mxu0 (!%p960_p7), %v1144_v61 }
  0x72   : > { %1034 = vmatprep.subr.bf16.mxu0 (!%p960_p7), %v1235_v60 }
  0x75   : > { %1035 = vmatpush3.bf16.msra.mxu0 (!%p960_p7), %v1145_v62 }
  0x76   : > { %1036 = vmatprep.subr.bf16.mxu0 (!%p960_p7), %v1235_v60 }
  0x79   : > { %1037 = vmatpush3.bf16.msra.mxu0 (!%p960_p7), %v1146_v63 }
  0x7a   : > { %1038 = vmatprep.subr.bf16.mxu0 (!%p960_p7), %v1235_v60 }
  0x7d   : > { %1039 = vmatpush3.bf16.msra.mxu0 (!%p960_p7), %v1147_v0 }
  0x7e   : > { %1040 = vmatprep.subr.bf16.mxu0 (!%p960_p7), %v1235_v60 }
  0x81   : > { %1041 = vmatpush3.bf16.msra.mxu0 (!%p960_p7), %v1148_v1 }
  0x82   : > { %1042 = vmatprep.subr.bf16.mxu0 (!%p960_p7), %v1235_v60 }
  0x85   : > { %1043 = vmatpush3.bf16.msra.mxu0 (!%p960_p7), %v1149_v2 }
  0x86   : > { %1044 = vmatprep.subr.bf16.mxu0 (!%p960_p7), %v1235_v60 }
  0x89   : > { %1045 = vmatpush3.bf16.msra.mxu0 (!%p960_p7), %v1150_v8 }
 0x13f   : > { %v993_v41 = vpop.f32.mrb[0].mxu0 }
 0x140   : > { %v1015_v42 = vpop.f32.mrb[0].mxu1  ;;  %v994_v43 = vpop.f32.mrb[1].mxu0 }
 0x141   : > { %v995_v44 = vadd.f32 %v994_v43, %v993_v41  ;;  %v1016_v45 = vpop.f32.mrb[1].mxu1  ;;  %v996_v46 = vpop.f32.mrb[2].mxu0 }
 0x142   : > { %v1017_v47 = vadd.f32 %v1016_v45, %v1015_v42  ;;  %v1018_v48 = vpop.f32.mrb[2].mxu1  ;;  %v997_v49 = vpop.f32.mrb[3].mxu0 }
 0x143   : > { %v998_v51 = vadd.f32 %v997_v49, %v996_v46  ;;  %v1019_v52 = vpop.f32.mrb[3].mxu1 }
 0x144   : > { %v677_v53 = vadd.f32 %v1017_v47, %v995_v44  ;;  %v1020_v54 = vadd.f32 %v1019_v52, %v1018_v48  ;;  %690 = sbr.rel (%p960_p7) target bundleno = 559 (0x22f), region = 75 }
 0x146   : > { %v683_v56 = vadd.f32 %v677_v53, %v319_v50  ;;  %v680_v57 = vadd.f32 %v1020_v54, %v998_v51 }
 0x148   : > { %685 = vst [vmem:[#allocation2] sm:$0xff] %v683_v56  ;;  %v684_v58 = vadd.f32 %v680_v57, %v320_v55 }
 0x14a   : > { %686 = vst [vmem:[#allocation2 + $0x8] sm:$0xff] %v684_v58 }
 0x14f   : > { %v691_v3 = vld [vmem:[#allocation2] sm:$0xff] }
 0x150   : > { %v700_v6 = vadd.f32 %v961_v5, %v691_v3 }
 0x151   : > { %v692_v4 = vld [vmem:[#allocation2 + $0x8] sm:$0xff] }
 0x152   : > { %v701_v7 = vadd.f32 %v961_v5, %v692_v4 }
 0x154   : > { %v702_v9 = vpack.c.bf16 %v701_v7, %v700_v6 }
 0x156   : > { %1047 = vmatmul.mubr.bf16.vlgmr.msra.gmra.mrb[0].mxu0 %v702_v9 }
 0x229   : > { %v808_v11 = vpop.f32.mrb[0].mxu0 }
 0x22a   : > { %v809_v12 = vadd.f32 %v962_v10, %v808_v11  ;;  %v1048_v13 = vpop.f32.mrb[1].mxu0 }
 0x22b   : > { %v811_v14 = vpop.f32.mrb[2].mxu0 }
 0x22c   : > { %815 = vst [vmem:[%s1466_s5] sm:$0xff] %v809_v12  ;;  %v812_v15 = vadd.f32 %v962_v10, %v811_v14  ;;  %v1049_v16 = vpop.f32.mrb[3].mxu0 }
 0x22e   : > { %816 = vst [vmem:[%s1466_s5 + $0x8] sm:$0xff] %v812_v15 }
 0x22f PF: > { %s18_s23 = sadd.s32 1, %s1229_s23   ;;  %s1469_s18 = smov %s1213_s19 }
 0x230   : > { %p15_p2 = scmp.ge.s32.totalorder %s18_s23, 4   ;;  %s1470_s19 = smov %s1217_s20 }
 0x231   : > { %s1471_s20 = smov %s1315_s30  ;;  %s1472_s21 = smov %s1225_s22 }
 0x232   : > { %s1473_s22 = smov %s1475_s25  ;;  %17 = sbr.rel (!%p15_p2) target bundleno = 4 (0x4), region = 119 }
 0x239   :  { %839 = vsyncpa [#allocation5], 1 }
 0x23a   :  { %841 = vsyncpa [#allocation5 + $0x1], 1 }

// kernel: _forward_impl.1
= control target key start
LH: loop header
LB: loop body
LE: loop exit
PB: predicated region body
PF: predicated region fallthrough
CT: control target
= control target key end

     0   :  { %10 = vsyncpa [#allocation5], 0  ;;  %s1461_s0 = inlined_call_operand.vmem [shape: bf16[16,1024], index: 0, kind: input, shape index: {}]   ;;  %s1462_s1 = inlined_call_operand.hbm [shape: bf16[1024,128], index: 1, kind: input, shape index: {}]   ;;  %s1463_s2 = inlined_call_operand.vmem [shape: f32[1,128], index: 2, kind: input, shape index: {}]   ;;  %s1464_s3 = inlined_call_operand.vmem [shape: bf16[128,128], index: 3, kind: input, shape index: {}]   ;;  %s1465_s4 = inlined_call_operand.vmem [shape: f32[1,128], index: 4, kind: input, shape index: {}]   ;;  %s1466_s5 = inlined_call_operand.vmem [shape: f32[16,128], index: 5, kind: output, shape index: {}]  }
   0x1   :  { %12 = vsyncpa [#allocation5 + $0x1], 0  ;;  %s1267_s18 = smov 0   ;;  %s1269_s19 = smov 0  }
   0x2   :  { %s1271_s20 = smov 0   ;;  %s1273_s21 = smov 0  }
   0x3   :  { %s1275_s22 = smov 0   ;;  %s1277_s23 = smov 0  }
   0x4 LB: > { %s911_s24 = sadd.s32 4294967295, %s1229_s23   ;;  %s27_s25 = sadd.s32 1, %s1225_s22  ;;  %s1229_s23 = sphi %s1277_s23, %s18_s23   ;;  %s1225_s22 = sphi %s1275_s22, %s1473_s22   ;;  %s1221_s21 = sphi %s1273_s21, %s1472_s21   ;;  %s1217_s20 = sphi %s1271_s20, %s1471_s20   ;;  %s1213_s19 = sphi %s1269_s19, %s1470_s19   ;;  %s1209_s18 = sphi %s1267_s18, %s1469_s18  }
   0x5   : > { %p28_p0 = scmp.ge.s32.totalorder %s27_s25, 2  ;;  %s39_s26 = sadd.s32 1, %s1217_s20 }
   0x6   : > { %p46_p1 = scmp.ne.s32.totalorder %s1217_s20, %s1213_s19  ;;  %p47_p2 = scmp.eq.s32.totalorder %s1229_s23, 0 }
   0x7   : > { %s1475_s25 = smov (%p28_p0, %s27_s25), 0  ;;  %p78_p4 = scmp.ne.s32.totalorder %s1213_s19, %s1209_s18 }
   0x8   : > { %p1303_p3 = por %p47_p2, %p46_p1  ;;  %s35_s28 = ssub.s32 %s1225_s22, %s1475_s25 }
   0x9   : > { %p79_p5 = scmp.eq.s32.totalorder %s911_s24, 0  ;;  %p37_p6 = scmp.eq.s32.totalorder %s35_s28, 0 }
   0xa   : > { %p913_p8 = scmp.ge.s32.totalorder %s1229_s23, 2 }
   0xb   : > { %p1310_p7 = por %p79_p5, %p78_p4 }
   0xc   : > { %s1315_s30 = scalar_select %p37_p6, %s1217_s20, %s39_s26  }
   0xd   : > { %196 = sbr.rel (%p913_p8) target bundleno = 53 (0x35), region = 28 }
  0x14   : > { %199 = sbr.rel (!%p1303_p3) target bundleno = 27 (0x1b), region = 32  ;;  %s201_s6 = sand.u32 (%p1303_p3), 1, %s1217_s20  }
  0x15   : > { %s975_s7 = sshll.u32 (%p1303_p3), %s1225_s22, 4  ;;  %s914_s8 = sshll.u32 (%p1303_p3), %s201_s6, 5 }
  0x16   : > { %s209_s11 = scalar_lea.vmem (%p1303_p3), %s1461_s0, %s975_s7  ;;  %s203_s12 = scalar_lea.vmem (%p1303_p3), [#allocation3], %s914_s8 }
  0x17   : > { %v222_v0 = vld [vmem:[%s209_s11] sm:$0xff] (%p1303_p3)  ;;  %v224_v1 = vld [vmem:[%s209_s11 + $0x8] sm:$0xff] (%p1303_p3) }
  0x18   : > { %v226_v2 = vld [vmem:[%s209_s11 + $0x20] sm:$0xff] (%p1303_p3)  ;;  %223 = vst [vmem:[%s203_s12] sm:$0xff] (%p1303_p3), %v222_v0  ;;  %225 = vst [vmem:[%s203_s12 + $0x8] sm:$0xff] (%p1303_p3), %v224_v1  ;;  %v228_v3 = vld [vmem:[%s209_s11 + $0x28] sm:$0xff] (%p1303_p3) }
  0x19   : > { %227 = vst [vmem:[%s203_s12 + $0x10] sm:$0xff] (%p1303_p3), %v226_v2  ;;  %229 = vst [vmem:[%s203_s12 + $0x18] sm:$0xff] (%p1303_p3), %v228_v3 }
  0x1b PF: > { %s236_s13 = sand.u32 1, %s1217_s20   ;;  %s976_s14 = sshll.u32 %s1225_s22, 12 }
  0x1c   : > { %s917_s15 = sshll.u32 %s236_s13, 8  ;;  %s1330_s18 = scalar_lea.hbm %s1462_s1, %s976_s14 }
  0x1d   : > { %s240_s24 = scalar_lea.vmem [#allocation4], %s917_s15  ;;  %s1334_s28 = scalar_lea.sflag [#allocation5], %s236_s13 }
  0x1e   : > { %s247_s26 = sshll.u32 %s240_s24, 4  ;;  %s1151_s6 = scalar_lea.hbm %s1330_s18, 4096  ;;  %s1332_s26 = int_to_ptr.vmem [resolvable:$true] %s247_s26 }
  0x1f   : > { %p1152_p9 = scmp.ne.s32.totalorder %s1330_s18, %s1151_s6  ;;  %s1155_s9 = scalar_lea.hbm %s1462_s1, 8192 }
  0x20   : > { %p1156_p12 = scmp.lt.u32.totalorder %s1330_s18, %s1462_s1  ;;  %p1157_p13 = scmp.lt.u32.totalorder %s1155_s9, %s1151_s6 }
  0x21   : > { %p1153_p10 = pnand %p1152_p9, %p1303_p3  ;;  %p1159_p1 = scmp.lt.u32.totalorder %s1151_s6, %s1330_s18 }
  0x22   : > { %p1158_p0 = por %p1157_p13, %p1156_p12 }
  0x23   : > { %p1154_p11 = pneg %p1153_p10 }
  0x24   : > { %p1160_p2 = por %p1159_p1, %p1158_p0 }
  0x26   : > { %p1161_p4 = pnand %p1160_p2, %p1154_p11 }
  0x28   : > { %1164 = shalt.err (!%p1161_p4)
}
  0x29   : > { %s1165_s12 = scalar_lea.vmem %s1332_s26, 4096  ;;  %s1231_s13 = smov [#allocation4]  }
  0x2a   : > { %p1166_p5 = scmp.ne.s32.totalorder %s1332_s26, %s1165_s12  ;;  %s1169_s14 = sshll.u32 %s1231_s13, 4  ;;  %s1170_s14 = int_to_ptr.vmem [resolvable:$false] %s1169_s14 }
  0x2b   : > { %s1171_s15 = scalar_lea.vmem %s1170_s14, 8192  ;;  %p1172_p9 = scmp.lt.s32.totalorder %s1332_s26, %s1170_s14 }
  0x2c   : > { %p1167_p6 = pnand %p1166_p5, %p1303_p3  ;;  %p1173_p10 = scmp.lt.s32.totalorder %s1171_s15, %s1165_s12 }
  0x2e   : > { %p1168_p8 = pneg %p1167_p6  ;;  %p1174_p12 = por %p1173_p10, %p1172_p9 }
  0x30   : > { %p1175_p13 = pnand %p1174_p12, %p1168_p8 }
  0x32   : > { %1178 = shalt.err (!%p1175_p13)
}
  0x33   : > { %s1232_s16 = smov 64   ;;  %s1233_s17 = smov 4  }
  0x34   : > { %1050 = dma.hbm_to_vmem [thread:$0]  (%p1303_p3), %s1330_s18, 4096, %s1332_s26, %s1334_s28, %s1232_s16, %s1232_s16, %s1233_s17  }
  0x35 PF: > { %p920_p11 = scmp.ge.s32.totalorder %s1229_s23, 1  ;;  %p255_p0 = scmp.lt.s32.totalorder %s1229_s23, 3 }
  0x37   : > { %p256_p1 = pnand %p920_p11, %p255_p0 }
  0x38   : > { %s262_s24 = sand.u32 (!%p256_p1), 1, %s1213_s19  }
  0x39   : > { %259 = sbr.rel (%p256_p1) target bundleno = 559 (0x22f), region = 59  ;;  %s921_s6 = sshll.u32 (!%p256_p1), %s262_s24, 5 }
  0x3a   : > { %s922_s7 = sshll.u32 (!%p256_p1), %s262_s24, 8  ;;  %s1361_s8 = scalar_lea.vmem (!%p256_p1), [#allocation3], %s921_s6 }
  0x3b   : > { %s269_s9 = scalar_lea.sflag (!%p256_p1), [#allocation5], %s262_s24  ;;  %s1363_s10 = scalar_lea.vmem (!%p256_p1), [#allocation4], %s922_s7 }
  0x40   : > { %1204 = dma.done.wait (%p1310_p7), %s269_s9, 4096  }
  0x41   : > { %1206 = vsyncadd (%p1310_p7), %s269_s9, 4294963200  ;;  %p923_p3 = scmp.ne.s32.totalorder %s1221_s21, 0 }
  0x42   : > { %v1234_v4 = vmov (!%p923_p3), 0.0  }
  0x43   : > { %316 = sbr.rel (%p923_p3) target bundleno = 74 (0x4a), region = 71  ;;  %317 = vst [vmem:[#allocation2] sm:$0xff] (!%p923_p3), %v1234_v4  ;;  %318 = vst [vmem:[#allocation2 + $0x8] sm:$0xff] (!%p923_p3), %v1234_v4 }
  0x4a PF: > { %v1105_v5 = vld [vmem:[%s1363_s10 + $0x40] sm:$0xff]   ;;  %v1109_v9 = vld [vmem:[%s1363_s10 + $0x48] sm:$0xff]   ;;  %v1113_v13 = vld [vmem:[%s1363_s10 + $0x50] sm:$0xff]   ;;  %p960_p7 = scmp.ne.s32.totalorder %s1221_s21, 1 }
  0x4b   : > { %v1106_v6 = vld [vmem:[%s1363_s10 + $0xc0] sm:$0xff]   ;;  %977 = vmatprep.subr.bf16.mxu0 %v1105_v5  ;;  %v1110_v10 = vld [vmem:[%s1363_s10 + $0xc8] sm:$0xff]   ;;  %v1114_v14 = vld [vmem:[%s1363_s10 + $0xd0] sm:$0xff]   ;;  %v1235_v60 = vmov (!%p960_p7), 0.0   ;;  %vm1236_vm0 = vmmov (!%p960_p7), 0  }
  0x4c   : > { %v1107_v7 = vld [vmem:[%s1363_s10] sm:$0xff]   ;;  %999 = vmatprep.subr.bf16.mxu1 %v1106_v6  ;;  %v1111_v11 = vld [vmem:[%s1363_s10 + $0x8] sm:$0xff]   ;;  %v1115_v15 = vld [vmem:[%s1363_s10 + $0x10] sm:$0xff]  }
  0x4d   : > { %v1108_v8 = vld [vmem:[%s1363_s10 + $0x80] sm:$0xff]   ;;  %978 = vmatpush3.bf16.msra.mxu0 %v1107_v7  ;;  %v1112_v12 = vld [vmem:[%s1363_s10 + $0x88] sm:$0xff]   ;;  %v1116_v16 = vld [vmem:[%s1363_s10 + $0x90] sm:$0xff]  }
  0x4e   : > { %1000 = vmatpush3.bf16.msra.mxu1 %v1108_v8  ;;  %979 = vmatprep.subr.bf16.mxu0 %v1109_v9  ;;  %v1117_v17 = vld [vmem:[%s1363_s10 + $0x58] sm:$0xff]   ;;  %v1121_v21 = vld [vmem:[%s1363_s10 + $0x60] sm:$0xff]   ;;  %v1125_v25 = vld [vmem:[%s1363_s10 + $0x68] sm:$0xff]  }
  0x4f   : > { %1001 = vmatprep.subr.bf16.mxu1 %v1110_v10  ;;  %v1118_v18 = vld [vmem:[%s1363_s10 + $0xd8] sm:$0xff]   ;;  %v1122_v22 = vld [vmem:[%s1363_s10 + $0xe0] sm:$0xff]   ;;  %v1126_v26 = vld [vmem:[%s1363_s10 + $0xe8] sm:$0xff]  }
  0x50   : > { %v1119_v19 = vld [vmem:[%s1363_s10 + $0x18] sm:$0xff]   ;;  %v1123_v23 = vld [vmem:[%s1363_s10 + $0x20] sm:$0xff]   ;;  %v1127_v27 = vld [vmem:[%s1363_s10 + $0x28] sm:$0xff]  }
  0x51   : > { %980 = vmatpush3.bf16.msra.mxu0 %v1111_v11  ;;  %v1120_v20 = vld [vmem:[%s1363_s10 + $0x98] sm:$0xff]   ;;  %v1124_v24 = vld [vmem:[%s1363_s10 + $0xa0] sm:$0xff]   ;;  %v1128_v28 = vld [vmem:[%s1363_s10 + $0xa8] sm:$0xff]  }
  0x52   : > { %1002 = vmatpush3.bf16.msra.mxu1 %v1112_v12  ;;  %981 = vmatprep.subr.bf16.mxu0 %v1113_v13  ;;  %v1129_v29 = vld [vmem:[%s1363_s10 + $0x70] sm:$0xff]   ;;  %v1133_v33 = vld [vmem:[%s1363_s10 + $0x78] sm:$0xff]   ;;  %v1145_v62 = vld [vmem:[%s1464_s3 + $0x10] sm:$0xff] (!%p960_p7)  }
  0x53   : > { %1003 = vmatprep.subr.bf16.mxu1 %v1114_v14  ;;  %v1130_v30 = vld [vmem:[%s1363_s10 + $0xf0] sm:$0xff]   ;;  %v1134_v34 = vld [vmem:[%s1363_s10 + $0xf8] sm:$0xff]   ;;  %v1146_v63 = vld [vmem:[%s1464_s3 + $0x18] sm:$0xff] (!%p960_p7)  }
  0x54   : > { %v1131_v31 = vld [vmem:[%s1363_s10 + $0x30] sm:$0xff]   ;;  %v1135_v35 = vld [vmem:[%s1363_s10 + $0x38] sm:$0xff]   ;;  %v1149_v2 = vld [vmem:[%s1464_s3 + $0x30] sm:$0xff] (!%p960_p7)  }
  0x55   : > { %982 = vmatpush3.bf16.msra.mxu0 %v1115_v15  ;;  %v1132_v32 = vld [vmem:[%s1363_s10 + $0xb0] sm:$0xff]   ;;  %v1136_v36 = vld [vmem:[%s1363_s10 + $0xb8] sm:$0xff]   ;;  %v1150_v8 = vld [vmem:[%s1464_s3 + $0x38] sm:$0xff] (!%p960_p7)  }
  0x56   : > { %1004 = vmatpush3.bf16.msra.mxu1 %v1116_v16  ;;  %983 = vmatprep.subr.bf16.mxu0 %v1117_v17  ;;  %v1137_v37 = vld [vmem:[%s1361_s8] ss:$16 sps:$4 sm:$0xff]   ;;  %v1139_v38 = vld [vmem:[%s1361_s8 + $0x4] ss:$16 sps:$4 sm:$0xff]   ;;  %v1140_v39 = vld [vmem:[%s1361_s8 + $0x8] ss:$16 sps:$4 sm:$0xff]  }
  0x57   : > { %1005 = vmatprep.subr.bf16.mxu1 %v1118_v18  ;;  %v1142_v40 = vld [vmem:[%s1361_s8 + $0xc] ss:$16 sps:$4 sm:$0xff]   ;;  %633 = vmatprep.mubr.bf16.mxu0 %v1139_v38  ;;  %v319_v50 = vld [vmem:[#allocation2] sm:$0xff] }
  0x58   : > { %674 = vmatprep.mubr.bf16.mxu1 %v1142_v40  ;;  %v320_v55 = vld [vmem:[#allocation2 + $0x8] sm:$0xff]  ;;  %v1143_v59 = vld [vmem:[%s1464_s3] sm:$0xff] (!%p960_p7)  }
  0x59   : > { %984 = vmatpush3.bf16.msra.mxu0 %v1119_v19  ;;  %v1144_v61 = vld [vmem:[%s1464_s3 + $0x8] sm:$0xff] (!%p960_p7)   ;;  %v1147_v0 = vld [vmem:[%s1464_s3 + $0x20] sm:$0xff] (!%p960_p7)  }
  0x5a   : > { %1006 = vmatpush3.bf16.msra.mxu1 %v1120_v20  ;;  %985 = vmatprep.subr.bf16.mxu0 %v1121_v21  ;;  %v1148_v1 = vld [vmem:[%s1464_s3 + $0x28] sm:$0xff] (!%p960_p7)   ;;  %v961_v5 = vld [vmem:[%s1463_s2] ss:$0 sm:$0xff] (!%p960_p7) }
  0x5b   : > { %1007 = vmatprep.subr.bf16.mxu1 %v1122_v22  ;;  %v962_v10 = vld [vmem:[%s1465_s4] ss:$0 sm:$0xff] (!%p960_p7) }
  0x5d   : > { %986 = vmatpush3.bf16.msra.mxu0 %v1123_v23 }
  0x5e   : > { %1008 = vmatpush3.bf16.msra.mxu1 %v1124_v24  ;;  %987 = vmatprep.subr.bf16.mxu0 %v1125_v25 }
  0x5f   : > { %1009 = vmatprep.subr.bf16.mxu1 %v1126_v26 }
  0x61   : > { %988 = vmatpush3.bf16.msra.mxu0 %v1127_v27 }
  0x62   : > { %1010 = vmatpush3.bf16.msra.mxu1 %v1128_v28  ;;  %989 = vmatprep.subr.bf16.mxu0 %v1129_v29 }
  0x63   : > { %1011 = vmatprep.subr.bf16.mxu1 %v1130_v30 }
  0x65   : > { %990 = vmatpush3.bf16.msra.mxu0 %v1131_v31 }
  0x66   : > { %1012 = vmatpush3.bf16.msra.mxu1 %v1132_v32  ;;  %991 = vmatprep.subr.bf16.mxu0 %v1133_v33 }
  0x67   : > { %1013 = vmatprep.subr.bf16.mxu1 %v1134_v34 }
  0x69   : > { %992 = vmatpush3.bf16.msra.mxu0 %v1135_v35 }
  0x6a   : > { %1014 = vmatpush3.bf16.msra.mxu1 %v1136_v36  ;;  %1030 = vmatprep.subr.bf16.mxu0 (!%p960_p7), %v1235_v60 }
  0x6c   : > { %634 = vmatmul.mubr.bf16.vlgmr.msra.gmra.mrb[0].mxu0 %v1137_v37 }
  0x6d   : > { %675 = vmatmul.mubr.bf16.vlgmr.msra.gmra.mrb[0].mxu1 %v1140_v39  ;;  %1031 = vmatpush3.bf16.msra.mxu0 (!%p960_p7), %v1143_v59 }
  0x6e   : > { %1046 = vmatprep.mubr.msk.bf16.mxu0 (!%p960_p7), %vm1236_vm0, %v1235_v60  ;;  %1032 = vmatprep.subr.bf16.mxu0 (!%p960_p7), %v1235_v60 }
  0x71   : > { %1033 = vmatpush3.bf16.msra.mxu0 (!%p960_p7), %v1144_v61 }
  0x72   : > { %1034 = vmatprep.subr.bf16.mxu0 (!%p960_p7), %v1235_v60 }
  0x75   : > { %1035 = vmatpush3.bf16.msra.mxu0 (!%p960_p7), %v1145_v62 }
  0x76   : > { %1036 = vmatprep.subr.bf16.mxu0 (!%p960_p7), %v1235_v60 }
  0x79   : > { %1037 = vmatpush3.bf16.msra.mxu0 (!%p960_p7), %v1146_v63 }
  0x7a   : > { %1038 = vmatprep.subr.bf16.mxu0 (!%p960_p7), %v1235_v60 }
  0x7d   : > { %1039 = vmatpush3.bf16.msra.mxu0 (!%p960_p7), %v1147_v0 }
  0x7e   : > { %1040 = vmatprep.subr.bf16.mxu0 (!%p960_p7), %v1235_v60 }
  0x81   : > { %1041 = vmatpush3.bf16.msra.mxu0 (!%p960_p7), %v1148_v1 }
  0x82   : > { %1042 = vmatprep.subr.bf16.mxu0 (!%p960_p7), %v1235_v60 }
  0x85   : > { %1043 = vmatpush3.bf16.msra.mxu0 (!%p960_p7), %v1149_v2 }
  0x86   : > { %1044 = vmatprep.subr.bf16.mxu0 (!%p960_p7), %v1235_v60 }
  0x89   : > { %1045 = vmatpush3.bf16.msra.mxu0 (!%p960_p7), %v1150_v8 }
 0x13f   : > { %v993_v41 = vpop.f32.mrb[0].mxu0 }
 0x140   : > { %v1015_v42 = vpop.f32.mrb[0].mxu1  ;;  %v994_v43 = vpop.f32.mrb[1].mxu0 }
 0x141   : > { %v995_v44 = vadd.f32 %v994_v43, %v993_v41  ;;  %v1016_v45 = vpop.f32.mrb[1].mxu1  ;;  %v996_v46 = vpop.f32.mrb[2].mxu0 }
 0x142   : > { %v1017_v47 = vadd.f32 %v1016_v45, %v1015_v42  ;;  %v1018_v48 = vpop.f32.mrb[2].mxu1  ;;  %v997_v49 = vpop.f32.mrb[3].mxu0 }
 0x143   : > { %v998_v51 = vadd.f32 %v997_v49, %v996_v46  ;;  %v1019_v52 = vpop.f32.mrb[3].mxu1 }
 0x144   : > { %v677_v53 = vadd.f32 %v1017_v47, %v995_v44  ;;  %v1020_v54 = vadd.f32 %v1019_v52, %v1018_v48  ;;  %690 = sbr.rel (%p960_p7) target bundleno = 559 (0x22f), region = 75 }
 0x146   : > { %v683_v56 = vadd.f32 %v677_v53, %v319_v50  ;;  %v680_v57 = vadd.f32 %v1020_v54, %v998_v51 }
 0x148   : > { %685 = vst [vmem:[#allocation2] sm:$0xff] %v683_v56  ;;  %v684_v58 = vadd.f32 %v680_v57, %v320_v55 }
 0x14a   : > { %686 = vst [vmem:[#allocation2 + $0x8] sm:$0xff] %v684_v58 }
 0x14f   : > { %v691_v3 = vld [vmem:[#allocation2] sm:$0xff] }
 0x150   : > { %v700_v6 = vadd.f32 %v961_v5, %v691_v3 }
 0x151   : > { %v692_v4 = vld [vmem:[#allocation2 + $0x8] sm:$0xff] }
 0x152   : > { %v701_v7 = vadd.f32 %v961_v5, %v692_v4 }
 0x154   : > { %v702_v9 = vpack.c.bf16 %v701_v7, %v700_v6 }
 0x156   : > { %1047 = vmatmul.mubr.bf16.vlgmr.msra.gmra.mrb[0].mxu0 %v702_v9 }
 0x229   : > { %v808_v11 = vpop.f32.mrb[0].mxu0 }
 0x22a   : > { %v809_v12 = vadd.f32 %v962_v10, %v808_v11  ;;  %v1048_v13 = vpop.f32.mrb[1].mxu0 }
 0x22b   : > { %v811_v14 = vpop.f32.mrb[2].mxu0 }
 0x22c   : > { %815 = vst [vmem:[%s1466_s5] sm:$0xff] %v809_v12  ;;  %v812_v15 = vadd.f32 %v962_v10, %v811_v14  ;;  %v1049_v16 = vpop.f32.mrb[3].mxu0 }
 0x22e   : > { %816 = vst [vmem:[%s1466_s5 + $0x8] sm:$0xff] %v812_v15 }
 0x22f PF: > { %s18_s23 = sadd.s32 1, %s1229_s23   ;;  %s1469_s18 = smov %s1213_s19 }
 0x230   : > { %p15_p2 = scmp.ge.s32.totalorder %s18_s23, 4   ;;  %s1470_s19 = smov %s1217_s20 }
 0x231   : > { %s1471_s20 = smov %s1315_s30  ;;  %s1472_s21 = smov %s1225_s22 }
 0x232   : > { %s1473_s22 = smov %s1475_s25  ;;  %17 = sbr.rel (!%p15_p2) target bundleno = 4 (0x4), region = 119 }
 0x239   :  { %839 = vsyncpa [#allocation5], 1 }
 0x23a   :  { %841 = vsyncpa [#allocation5 + $0x1], 1 }

</bundles_post_ra>
